<compile_context>
chip_gen: v7x
topology: tpu7x:2x2x1
jax: 0.10.0
libtpu: 0.0.40
codegen_flags: <defaults>
</compile_context>

<pallas_src>
import math
import functools

import jax
import jax.numpy as jnp
from jax import lax
from jax.experimental import pallas as pl
from jax.experimental.pallas import tpu as pltpu


# Preferred tile sizes at realistic shapes (fall back to divisors / full
# extents when the dimension is small or not divisible, which keeps the
# (8, 128) BlockSpec exception valid at toy sizes).
_PREF_ROW_TILE = 256       # L tile for q rows
_PREF_KV_TILE = 256        # L tile for k/v
_PREF_CONTRACT_TILE = 512  # d_model contraction tile in the projections
# Budget against v7x's 64 MiB VMEM with headroom (also fine on v5e/v6e).
_VMEM_LIMIT = 48 * 1024 * 1024


def _pick_tile(dim, pref, unit):
    """Largest power-of-two-ish tile <= pref that divides dim and is a
    multiple of `unit`; otherwise fall back to the full extent (always a
    legal BlockSpec shape)."""
    if dim <= pref:
        return dim
    t = pref
    while t >= unit:
        if dim % t == 0 and t % unit == 0:
            return t
        t //= 2
    return dim


# ---------------------------------------------------------------------------
# Kernel 1: linear projection, emitted head-major:  [B, L, D] -> [B, H, L, dt]
# grid = (b, h, l_tile, d_model_tile);  contraction axis last ("arbitrary").
# ---------------------------------------------------------------------------
def _linear_heads_kernel(x_ref, w_ref, b_ref, o_ref, acc_ref, *, scale):
    ki = pl.program_id(3)

    @pl.when(ki == 0)
    def _():
        acc_ref[...] = jnp.zeros_like(acc_ref)

    acc_ref[...] += jnp.dot(x_ref[0], w_ref[0],
                            preferred_element_type=jnp.float32)

    @pl.when(ki == pl.num_programs(3) - 1)
    def _():
        out = acc_ref[...] + b_ref[0]
        if scale != 1.0:               # fold 1/sqrt(dt) into the Q projection
            out = out * scale
        o_ref[0, 0] = out.astype(o_ref.dtype)


# ---------------------------------------------------------------------------
# Kernel 2: flash attention (online softmax) fused with the output projection.
# grid = (b, q_tile, head, kv_tile);  head & kv axes last ("arbitrary").
# Output block (1, tl, D) stays resident across both reduction axes.
# ---------------------------------------------------------------------------
def _attn_outproj_kernel(q_ref, k_ref, v_ref, wc_ref, bc_ref, o_ref,
                         m_ref, l_ref, acc_ref, oacc_ref):
    h = pl.program_id(2)
    kv = pl.program_id(3)
    nh = pl.num_programs(2)
    nkv = pl.num_programs(3)

    @pl.when(jnp.logical_and(h == 0, kv == 0))
    def _():
        oacc_ref[...] = jnp.zeros_like(oacc_ref)

    @pl.when(kv == 0)
    def _():
        m_ref[...] = jnp.full_like(m_ref, -jnp.inf)
        l_ref[...] = jnp.zeros_like(l_ref)
        acc_ref[...] = jnp.zeros_like(acc_ref)

    q = q_ref[0, 0]          # (tl, dt), already scaled by 1/sqrt(dt)
    k = k_ref[0, 0]          # (tkv, dt)
    v = v_ref[0, 0]          # (tkv, dt)

    # Contract the last dims directly (no explicit transpose of k).
    s = lax.dot_general(q, k, (((1,), (1,)), ((), ())),
                        preferred_element_type=jnp.float32)     # (tl, tkv)

    # TODO(synk): optional attention-mask path (mask=None in this forward).
    m_prev = m_ref[...]
    m_new = jnp.maximum(m_prev, jnp.max(s, axis=-1, keepdims=True))
    alpha = jnp.exp(m_prev - m_new)
    p = jnp.exp(s - m_new)
    l_ref[...] = alpha * l_ref[...] + jnp.sum(p, axis=-1, keepdims=True)
    acc_ref[...] = alpha * acc_ref[...] + jnp.dot(
        p.astype(v.dtype), v, preferred_element_type=jnp.float32)
    m_ref[...] = m_new

    @pl.when(kv == nkv - 1)
    def _():
        # Normalize (one exact reciprocal on a (tl, 1) vector) and immediately
        # contract this head's context with its slice of w_concat.
        inv_l = pl.reciprocal(l_ref[...])
        head_out = (acc_ref[...] * inv_l).astype(o_ref.dtype)
        oacc_ref[...] += jnp.dot(head_out, wc_ref[0],
                                 preferred_element_type=jnp.float32)

    @pl.when(jnp.logical_and(h == nh - 1, kv == nkv - 1))
    def _():
        o_ref[0] = (oacc_ref[...] + bc_ref[...]).astype(o_ref.dtype)


# ---------------------------------------------------------------------------
# Wrapper
# ---------------------------------------------------------------------------
def attention_forward(xq, xk, xv, params, n_head):
    B, L, D = xq.shape
    assert D % n_head == 0, "d_model must be divisible by n_head"
    dt = D // n_head
    scale = 1.0 / math.sqrt(dt)
    dtype = xq.dtype

    # One-time head-major weight/bias layout (so dt is the true last dim and
    # per-head slicing never violates the (8, 128) block rules).
    def w_to_heads(w):   # [D, D] -> [H, D, dt]
        return w.reshape(D, n_head, dt).transpose(1, 0, 2)

    def b_to_heads(b):   # [1, D] -> [H, 1, dt]
        return b.reshape(1, n_head, dt).transpose(1, 0, 2)

    wq_h, wk_h, wv_h = (w_to_heads(params[k]) for k in ("wq", "wk", "wv"))
    bq_h, bk_h, bv_h = (b_to_heads(params[k]) for k in ("bq", "bk", "bv"))
    wc_h = params["wc"].reshape(n_head, dt, D)   # [H, dt, D]
    bc = params["bc"]                            # [1, D]

    tl = _pick_tile(L, _PREF_ROW_TILE, 8)
    tkv = _pick_tile(L, _PREF_KV_TILE, 8)
    tc = _pick_tile(D, _PREF_CONTRACT_TILE, 128)

    # Keep the fused f32 output accumulator (tl, D) modest at very large D.
    while (tl >= 32 and tl % 16 == 0 and L % (tl // 2) == 0
           and tl * D * 4 > 8 * (1 << 20)):
        tl //= 2

    fp32_bytes = 4

    # ---- Q/K/V projections (head-major output) ----
    def linear_heads(x, w_h, b_h, s):
        grid = (B, n_head, pl.cdiv(L, tl), pl.cdiv(D, tc))
        return pl.pallas_call(
            functools.partial(_linear_heads_kernel, scale=s),
            out_shape=jax.ShapeDtypeStruct((B, n_head, L, dt), dtype),
            grid=grid,
            in_specs=[
                pl.BlockSpec((1, tl, tc), lambda b, h, li, ki: (b, li, ki)),
                pl.BlockSpec((1, tc, dt), lambda b, h, li, ki: (h, ki, 0)),
                pl.BlockSpec((1, 1, dt), lambda b, h, li, ki: (h, 0, 0)),
            ],
            out_specs=pl.BlockSpec((1, 1, tl, dt),
                                   lambda b, h, li, ki: (b, h, li, 0)),
            scratch_shapes=[pltpu.VMEM((tl, dt), jnp.float32)],
            compiler_params=pltpu.CompilerParams(
                dimension_semantics=("parallel", "parallel", "parallel",
                                     "arbitrary"),
                vmem_limit_bytes=_VMEM_LIMIT),
            cost_estimate=pl.CostEstimate(
                flops=2 * B * L * D * D,
                transcendentals=0,
                bytes_accessed=fp32_bytes * (2 * B * L * D + D * D + D)),
        )(x, w_h, b_h)

    q = linear_heads(xq, wq_h, bq_h, scale)   # scale folded into Q
    k = linear_heads(xk, wk_h, bk_h, 1.0)
    v = linear_heads(xv, wv_h, bv_h, 1.0)

    # ---- fused flash attention + output projection (+ bias) ----
    out = pl.pallas_call(
        _attn_outproj_kernel,
        out_shape=jax.ShapeDtypeStruct((B, L, D), dtype),
        grid=(B, pl.cdiv(L, tl), n_head, pl.cdiv(L, tkv)),
        in_specs=[
            pl.BlockSpec((1, 1, tl, dt), lambda b, qi, h, ki: (b, h, qi, 0)),
            pl.BlockSpec((1, 1, tkv, dt), lambda b, qi, h, ki: (b, h, ki, 0)),
            pl.BlockSpec((1, 1, tkv, dt), lambda b, qi, h, ki: (b, h, ki, 0)),
            pl.BlockSpec((1, dt, D), lambda b, qi, h, ki: (h, 0, 0)),
            pl.BlockSpec((1, D), lambda b, qi, h, ki: (0, 0)),
        ],
        out_specs=pl.BlockSpec((1, tl, D), lambda b, qi, h, ki: (b, qi, 0)),
        scratch_shapes=[pltpu.VMEM((tl, 1), jnp.float32),   # running max m
                        pltpu.VMEM((tl, 1), jnp.float32),   # running sum l
                        pltpu.VMEM((tl, dt), jnp.float32),  # per-head context
                        pltpu.VMEM((tl, D), jnp.float32)],  # output accum
        compiler_params=pltpu.CompilerParams(
            dimension_semantics=("parallel", "parallel", "arbitrary",
                                 "arbitrary"),
            vmem_limit_bytes=_VMEM_LIMIT),
        cost_estimate=pl.CostEstimate(
            flops=4 * B * n_head * L * L * dt + 2 * B * L * D * D,
            transcendentals=B * n_head * L * L,
            bytes_accessed=fp32_bytes * (4 * B * L * D + D * D + D)),
    )(q, k, v, wc_h, bc)
    return out


# ---------------------------------------------------------------------------
# Params / reference / test
# ---------------------------------------------------------------------------
def init_params(key, d_model):
    """Deterministic init mimicking nn.Linear default (uniform +/- 1/sqrt(in)).

    Weights stored already transposed: [d_in, d_out]. Biases as [1, d_out].
    """
    bound = 1.0 / math.sqrt(d_model)
    keys = jax.random.split(key, 8)

    def u(k, shape):
        return jax.random.uniform(k, shape, jnp.float32, -bound, bound)

    return {
        "wq": u(keys[0], (d_model, d_model)), "bq": u(keys[1], (1, d_model)),
        "wk": u(keys[2], (d_model, d_model)), "bk": u(keys[3], (1, d_model)),
        "wv": u(keys[4], (d_model, d_model)), "bv": u(keys[5], (1, d_model)),
        "wc": u(keys[6], (d_model, d_model)), "bc": u(keys[7], (1, d_model)),
    }


def attention_reference(xq, xk, xv, params, n_head):
    """Pure-JAX reference replicating the PyTorch module semantics."""
    B, L, D = xq.shape
    dt = D // n_head
    q = xq @ params["wq"] + params["bq"]
    k = xk @ params["wk"] + params["bk"]
    v = xv @ params["wv"] + params["bv"]
    split = lambda t: t.reshape(B, L, n_head, dt).transpose(0, 2, 1, 3)
    q, k, v = split(q), split(k), split(v)
    score = jnp.einsum("bhld,bhmd->bhlm", q, k) / math.sqrt(dt)
    score = jax.nn.softmax(score, axis=-1)
    out = jnp.einsum("bhlm,bhmd->bhld", score, v)
    out = out.transpose(0, 2, 1, 3).reshape(B, L, D)
    return out @ params["wc"] + params["bc"]


if __name__ == "__main__":
    batch, seq, d_model, n_head = 2, 8, 32, 4

    key = jax.random.PRNGKey(0)
    kq, kk, kv, kp = jax.random.split(key, 4)
    xq = jax.random.normal(kq, (batch, seq, d_model), jnp.float32)
    xk = jax.random.normal(kk, (batch, seq, d_model), jnp.float32)
    xv = jax.random.normal(kv, (batch, seq, d_model), jnp.float32)
    params = init_params(kp, d_model)

    out = attention_forward(xq, xk, xv, params, n_head)
    out = jax.block_until_ready(out)

    ref = attention_reference(xq, xk, xv, params, n_head)
    assert out.shape == (batch, seq, d_model)
    assert jnp.allclose(out, ref, atol=1e-4, rtol=1e-4), "mismatch vs reference"

    print("KERNEL_OK")
</pallas_src>

<mosaic_0001>
module attributes {stable_mosaic.version = 11 : i64} {
  func.func @_linear_heads_kernel(%arg0: i32, %arg1: i32, %arg2: i32, %arg3: i32, %arg4: memref<1x8x32xf32, #tpu.memory_space<vmem>>, %arg5: memref<1x32x8xf32, #tpu.memory_space<vmem>>, %arg6: memref<1x1x8xf32, #tpu.memory_space<vmem>>, %arg7: memref<1x1x8x8xf32, #tpu.memory_space<vmem>>, %arg8: memref<8x8xf32, #tpu.memory_space<vmem>>) attributes {dimension_semantics = [#tpu.dimension_semantics<parallel>, #tpu.dimension_semantics<parallel>, #tpu.dimension_semantics<parallel>, #tpu.dimension_semantics<arbitrary>], iteration_bounds = array<i64: 2, 4, 1, 1>, scalar_prefetch = 0 : i64, scratch_operands = 1 : i64, tpu.core_type = #tpu.core_type<tc>, window_params = [{transform_indices = @transform_0, window_bounds = array<i64: 1, 8, 32>}, {transform_indices = @transform_1, window_bounds = array<i64: 1, 32, 8>}, {transform_indices = @transform_2, window_bounds = array<i64: 1, 1, 8>}, {transform_indices = @transform_3, window_bounds = array<i64: 1, 1, 8, 8>}]} {
    %c0_i32 = arith.constant 0 : i32
    %0 = arith.cmpi eq, %arg3, %c0_i32 : i32
    %1 = arith.extui %0 : i1 to i32
    %c0_i32_0 = arith.constant 0 : i32
    %2 = arith.cmpi ne, %1, %c0_i32_0 : i32
    scf.if %2 {
      %cst_12 = arith.constant 0.000000e+00 : f32
      %14 = vector.broadcast %cst_12 : f32 to vector<8x8xf32>
      %c0_13 = arith.constant 0 : index
      %c0_14 = arith.constant 0 : index
      %15 = vector.load %arg8[%c0_13, %c0_14] : memref<8x8xf32, #tpu.memory_space<vmem>>, vector<8x8xf32>
      tpu.vector_store %arg8[%c0_13, %c0_14], %14 {strides = array<i32>} : memref<8x8xf32, #tpu.memory_space<vmem>>, vector<8x8xf32>,
    } else {
    }
    %c0 = arith.constant 0 : index
    %c0_1 = arith.constant 0 : index
    %3 = vector.load %arg8[%c0, %c0_1] : memref<8x8xf32, #tpu.memory_space<vmem>>, vector<8x8xf32>
    %c0_2 = arith.constant 0 : index
    %c0_3 = arith.constant 0 : index
    %c0_4 = arith.constant 0 : index
    %4 = vector.load %arg4[%c0_2, %c0_3, %c0_4] : memref<1x8x32xf32, #tpu.memory_space<vmem>>, vector<1x8x32xf32>
    %5 = vector.shape_cast %4 : vector<1x8x32xf32> to vector<8x32xf32>
    %c0_5 = arith.constant 0 : index
    %c0_6 = arith.constant 0 : index
    %c0_7 = arith.constant 0 : index
    %6 = vector.load %arg5[%c0_5, %c0_6, %c0_7] : memref<1x32x8xf32, #tpu.memory_space<vmem>>, vector<1x32x8xf32>
    %7 = vector.shape_cast %6 : vector<1x32x8xf32> to vector<32x8xf32>
    %cst = arith.constant dense<0.000000e+00> : vector<8x8xf32>
    %8 = tpu.matmul %5, %7, %cst {dimension_numbers = #tpu.dot_dimension_numbers<[1], [0], [0], [1], [0, 0, 1, 1], [], []>} : vector<8x32xf32>, vector<32x8xf32>, vector<8x8xf32> -> vector<8x8xf32>
    %9 = arith.addf %3, %8 : vector<8x8xf32>
    %c0_8 = arith.constant 0 : index
    %c0_9 = arith.constant 0 : index
    %10 = vector.load %arg8[%c0_8, %c0_9] : memref<8x8xf32, #tpu.memory_space<vmem>>, vector<8x8xf32>
    tpu.vector_store %arg8[%c0_8, %c0_9], %9 {strides = array<i32>} : memref<8x8xf32, #tpu.memory_space<vmem>>, vector<8x8xf32>,
    %c0_i32_10 = arith.constant 0 : i32
    %11 = arith.cmpi eq, %arg3, %c0_i32_10 : i32
    %12 = arith.extui %11 : i1 to i32
    %c0_i32_11 = arith.constant 0 : i32
    %13 = arith.cmpi ne, %12, %c0_i32_11 : i32
    scf.if %13 {
      %c0_12 = arith.constant 0 : index
      %c0_13 = arith.constant 0 : index
      %14 = vector.load %arg8[%c0_12, %c0_13] : memref<8x8xf32, #tpu.memory_space<vmem>>, vector<8x8xf32>
      %c0_14 = arith.constant 0 : index
      %c0_15 = arith.constant 0 : index
      %c0_16 = arith.constant 0 : index
      %15 = vector.load %arg6[%c0_14, %c0_15, %c0_16] : memref<1x1x8xf32, #tpu.memory_space<vmem>>, vector<1x1x8xf32>
      %16 = vector.shape_cast %15 : vector<1x1x8xf32> to vector<1x8xf32>
      %17 = vector.broadcast %16 : vector<1x8xf32> to vector<8x8xf32>
      %18 = arith.addf %14, %17 : vector<8x8xf32>
      %cst_17 = arith.constant 0.353553385 : f32
      %19 = vector.broadcast %cst_17 : f32 to vector<8x8xf32>
      %20 = arith.mulf %18, %19 : vector<8x8xf32>
      %c0_18 = arith.constant 0 : index
      %c0_19 = arith.constant 0 : index
      %c0_20 = arith.constant 0 : index
      %c0_21 = arith.constant 0 : index
      %21 = vector.load %arg7[%c0_18, %c0_19, %c0_20, %c0_21] : memref<1x1x8x8xf32, #tpu.memory_space<vmem>>, vector<1x1x8x8xf32>
      %22 = vector.shape_cast %21 : vector<1x1x8x8xf32> to vector<8x8xf32>
      %23 = vector.shape_cast %20 : vector<8x8xf32> to vector<1x1x8x8xf32>
      tpu.vector_store %arg7[%c0_18, %c0_19, %c0_20, %c0_21], %23 {strides = array<i32>} : memref<1x1x8x8xf32, #tpu.memory_space<vmem>>, vector<1x1x8x8xf32>,
    } else {
    }
    return
  }
  func.func @transform_0(%arg0: i32, %arg1: i32, %arg2: i32, %arg3: i32) -> (i32, i32, i32) {
    %c0_i32 = arith.constant 0 : i32
    return %arg0, %arg2, %arg3 : i32, i32, i32
  }
  func.func @transform_1(%arg0: i32, %arg1: i32, %arg2: i32, %arg3: i32) -> (i32, i32, i32) {
    %c0_i32 = arith.constant 0 : i32
    %c0_i32_0 = arith.constant 0 : i32
    return %arg1, %arg3, %c0_i32 : i32, i32, i32
  }
  func.func @transform_2(%arg0: i32, %arg1: i32, %arg2: i32, %arg3: i32) -> (i32, i32, i32) {
    %c0_i32 = arith.constant 0 : i32
    %c0_i32_0 = arith.constant 0 : i32
    %c0_i32_1 = arith.constant 0 : i32
    return %arg1, %c0_i32, %c0_i32_0 : i32, i32, i32
  }
  func.func @transform_3(%arg0: i32, %arg1: i32, %arg2: i32, %arg3: i32) -> (i32, i32, i32, i32) {
    %c0_i32 = arith.constant 0 : i32
    %c0_i32_0 = arith.constant 0 : i32
    return %arg0, %arg1, %arg2, %c0_i32 : i32, i32, i32, i32
  }
}

</mosaic_0001>

<bundles_post_ra>
// kernel: tpu_custom_call.1
= control target key start
LH: loop header
LB: loop body
LE: loop exit
PB: predicated region body
PF: predicated region fallthrough
CT: control target
= control target key end

     0   :  { %8 = vsyncpa [#allocation4], 0  ;;  %s879_s0 = inlined_call_operand.vmem [shape: f32[2,8,32], index: 0, kind: input, shape index: {}]   ;;  %s880_s1 = inlined_call_operand.vmem [shape: f32[4,32,8], index: 1, kind: input, shape index: {}]   ;;  %s881_s2 = inlined_call_operand.vmem [shape: f32[4,1,8], index: 2, kind: input, shape index: {}]   ;;  %s882_s3 = inlined_call_operand.hbm [shape: f32[2,4,8,8], index: 3, kind: output, shape index: {}]  }
   0x1   :  { %10 = vsyncpa [#allocation4 + $0x1], 0  ;;  %s733_s12 = smov 0   ;;  %s735_s13 = smov 0  }
   0x2   :  { %s737_s14 = smov 0   ;;  %s739_s15 = smov 0  }
   0x3   :  { %s741_s16 = smov 0   ;;  %s743_s17 = smov 0  }
   0x4   :  { %s745_s18 = smov 0   ;;  %s747_s19 = smov 0  }
   0x5 LB: > { %s500_s20 = sadd.s32 4294967295, %s707_s19   ;;  %s501_s21 = sadd.s32 4294967294, %s707_s19   ;;  %s707_s19 = sphi %s747_s19, %s16_s19   ;;  %s703_s18 = sphi %s745_s18, %s891_s18   ;;  %s699_s17 = sphi %s743_s17, %s890_s17   ;;  %s695_s16 = sphi %s741_s16, %s889_s16   ;;  %s691_s15 = sphi %s739_s15, %s888_s15   ;;  %s687_s14 = sphi %s737_s14, %s887_s14   ;;  %s683_s13 = sphi %s735_s13, %s886_s13   ;;  %s679_s12 = sphi %s733_s12, %s885_s12  }
   0x6   : > { %s38_s22 = sadd.s32 1, %s699_s17  ;;  %s42_s23 = sadd.s32 1, %s703_s18 }
   0x7   : > { %p40_p0 = scmp.ge.s32.totalorder %s38_s22, 4  ;;  %p147_p1 = scmp.ne.s32.totalorder %s687_s14, %s683_s13 }
   0x8   : > { %p148_p2 = scmp.eq.s32.totalorder %s500_s20, 7  ;;  %p153_p5 = scmp.ne.s32.totalorder %s683_s13, %s679_s12 }
   0x9   : > { %s893_s22 = smov (%p40_p0, %s38_s22), 0  ;;  %s895_s23 = smov (!%p40_p0, %s42_s23), %s703_s18 }
   0xa   : > { %s131_s24 = ssub.s32 %s699_s17, %s893_s22  ;;  %p784_p3 = por %p148_p2, %p147_p1 }
   0xb   : > { %p44_p4 = scmp.ge.s32.totalorder %s895_s23, 2  ;;  %p154_p6 = scmp.eq.s32.totalorder %s501_s21, 7 }
   0xc   : > { %p504_p7 = scmp.ge.s32.totalorder %s707_s19, 1  ;;  %p204_p9 = scmp.lt.s32.totalorder %s707_s19, 9 }
   0xd   : > { %s897_s23 = smov (%p44_p4, %s895_s23), 0  ;;  %p793_p8 = por %p154_p6, %p153_p5 }
   0xe   : > { %s130_s27 = ssub.s32 %s703_s18, %s897_s23  ;;  %s137_s28 = sadd.s32 1, %s687_s14 }
   0xf   : > { %s132_s29 = sor.u32 %s131_s24, %s130_s27  ;;  %p205_p10 = pnand %p504_p7, %p204_p9 }
  0x10   : > { %p135_p11 = scmp.eq.s32.totalorder %s132_s29, 0  ;;  %p256_p12 = scmp.lt.s32.totalorder (!%p205_p10), %s691_s15, 3  ;;  %vm272_vm0 = vcmask (!%p205_p10), 64512   ;;  %v709_v0 = vmov (!%p205_p10), 0.0|0.0   ;;  %v710_v1 = vmov (!%p205_p10), 0.0   ;;  %vm711_vm1 = vmmov (!%p205_p10), 0  }
  0x11   : > { %208 = sbr.rel (%p205_p10) target bundleno = 278 (0x116), region = 32  ;;  %p245_p13 = scmp.lt.s32.totalorder (!%p205_p10), %s695_s16, 1  ;;  %533 = vmatprep.subr.bf16.mxu0 (!%p205_p10), %v709_v0  ;;  %273 = vst.msk [vmem:[#allocation2] sm:$0xff] (!%p205_p10), %vm272_vm0, %v710_v1  ;;  %530 = vmatprep.mubr.msk.f32.mxu0 (!%p205_p10), %vm711_vm1, %v710_v1  ;;  %vm280_vm2 = vcmask (!%p205_p10), 261120  }
  0x12   : > { %s802_s30 = scalar_select %p135_p11, %s687_s14, %s137_s28  }
  0x13   : > { %s242_s24 = sand.u32 (!%p205_p10), 1, %s683_s13   ;;  %s512_s28 = sshll.u32 (!%p205_p10), %s695_s16, 2 }
  0x14   : > { %s505_s27 = sshll.u32 (!%p205_p10), %s242_s24, 3  ;;  %s384_s7 = sadd.s32 (!%p205_p10), %s691_s15, %s512_s28 }
  0x15   : > { %s513_s8 = sshll.u32 (!%p205_p10), %s384_s7, 7 }
  0x18   : > { %s257_s4 = scalar_select %p256_p12, %s691_s15, 3  ;;  %v274_v9 = vld [vmem:[#allocation2] sm:$0xff] }
  0x19   : > { %s246_s5 = scalar_select %p245_p13, %s695_s16, 1 }
  0x1a   : > { %s516_s6 = sshll.u32 %s257_s4, 5  ;;  %s372_s15 = scalar_lea.sflag [#allocation4], %s242_s24 }
  0x1b   : > { %s263_s9 = scalar_lea.vmem %s880_s1, %s516_s6  ;;  %s506_s10 = sshll.u32 %s246_s5, 3 }
  0x1c   : > { %v276_v2 = vld [vmem:[%s263_s9] sm:$0xff]  ;;  %v277_v3 = vld [vmem:[%s263_s9 + $0x8] sm:$0xff]  ;;  %v278_v4 = vld [vmem:[%s263_s9 + $0x10] sm:$0xff]  ;;  %s254_s21 = scalar_lea.vmem %s879_s0, %s506_s10  ;;  %s267_s6 = scalar_lea.vmem %s881_s2, %s257_s4 }
  0x1d   : > { %v534_v5 = vpack.c.bf16 %v277_v3, %v276_v2  ;;  %v279_v6 = vld [vmem:[%s263_s9 + $0x18] sm:$0xff]  ;;  %v275_v8 = vld [vmem:[%s254_s21] sm:$0xff]  ;;  %s244_s9 = scalar_lea.vmem [#allocation3], %s505_s27  ;;  %s825_s21 = scalar_lea.hbm %s882_s3, %s513_s8 }
  0x1e   : > { %v537_v7 = vpack.c.bf16 %v279_v6, %v278_v4  ;;  %v510_v13 = vld [vmem:[%s267_s6] ss:$0 sm:$0xff]  ;;  %s388_s10 = sshll.u32 %s244_s9, 4  ;;  %s712_s4 = smov [#allocation3]   ;;  %s827_s10 = int_to_ptr.vmem [resolvable:$true] %s388_s10 }
  0x1f   : > { %535 = vmatpush3.bf16.msra.mxu0 %v534_v5  ;;  %s613_s16 = scalar_lea.vmem %s827_s10, 128  ;;  %s617_s27 = sshll.u32 %s712_s4, 4  ;;  %s618_s27 = int_to_ptr.vmem [resolvable:$false] %s617_s27 }
  0x20   : > { %536 = vmatprep.subr.bf16.mxu0 %v709_v0  ;;  %p614_p0 = scmp.ne.s32.totalorder %s827_s10, %s613_s16  ;;  %s619_s28 = scalar_lea.vmem %s618_s27, 256 }
  0x21   : > { %p620_p4 = scmp.lt.s32.totalorder %s827_s10, %s618_s27  ;;  %p621_p5 = scmp.lt.s32.totalorder %s619_s28, %s613_s16 }
  0x22   : > { %p615_p1 = pnand %p614_p0, %p784_p3 }
  0x23   : > { %538 = vmatpush3.bf16.msra.mxu0 %v537_v7  ;;  %p622_p6 = por %p621_p5, %p620_p4 }
  0x24   : > { %p616_p2 = pneg %p615_p1 }
  0x26   : > { %531 = vmatmul.mubr.msk.f32.vlgmr.msra.gmra.mrb[0].mxu0 %vm280_vm2, %v275_v8  ;;  %p623_p7 = pnand %p622_p6, %p616_p2 }
  0xf9   : > { %v350_v10 = vpop.f32.mrb[0].mxu0 }
  0xfa   : > { %v354_v11 = vadd.f32 %v350_v10, %v274_v9  ;;  %v532_v12 = vpop.f32.mrb[1].mxu0 }
  0xfc   : > { %356 = vst.msk [vmem:[#allocation2] sm:$0xff] %vm272_vm0, %v354_v11 }
 0x103   : > { %v360_v14 = vld [vmem:[#allocation2] sm:$0xff] }
 0x104   : > { %v368_v15 = vadd.f32 %v510_v13, %v360_v14 }
 0x106   : > { %v369_v16 = vmul.f32 0.35355338, %v368_v15 }
 0x108   : > { %370 = vst.msk [vmem:[%s244_s9] sm:$0xff] %vm272_vm0, %v369_v16 }
 0x109   : > { %626 = shalt.err (!%p623_p7)
}
 0x10a   : > { %s627_s24 = scalar_lea.hbm %s825_s21, 128  ;;  %s631_s6 = scalar_lea.hbm %s882_s3, 1024 }
 0x10b   : > { %p628_p9 = scmp.ne.s32.totalorder %s825_s21, %s627_s24  ;;  %p632_p12 = scmp.lt.u32.totalorder %s825_s21, %s882_s3 }
 0x10c   : > { %p633_p13 = scmp.lt.u32.totalorder %s631_s6, %s627_s24  ;;  %p635_p1 = scmp.lt.u32.totalorder %s627_s24, %s825_s21 }
 0x10d   : > { %p629_p10 = pnand %p628_p9, %p784_p3 }
 0x10e   : > { %p634_p0 = por %p633_p13, %p632_p12 }
 0x10f   : > { %p630_p11 = pneg %p629_p10 }
 0x110   : > { %p636_p2 = por %p635_p1, %p634_p0 }
 0x112   : > { %p637_p4 = pnand %p636_p2, %p630_p11 }
 0x114   : > { %640 = shalt.err (!%p637_p4)
}
 0x115   : > { %539 = dma.vmem_to_hbm [thread:$0]  (%p784_p3), %s827_s10, 128, %s825_s21, %s372_s15  }
 0x116 PF: > { %p545_p5 = scmp.ge.s32.totalorder %s707_s19, 2  ;;  %s400_s9 = sand.u32 1, %s679_s12  }
 0x117   : > { %s401_s11 = scalar_lea.sflag [#allocation4], %s400_s9 }
 0x118   : > { %p542_p6 = pnand %p545_p5, %p793_p8 }
 0x11a   : > { %674 = dma.done.wait (!%p542_p6), %s401_s11, 128  }
 0x11b   : > { %676 = vsyncadd (!%p542_p6), %s401_s11, 4294967168  ;;  %s16_s19 = sadd.s32 1, %s707_s19   ;;  %s885_s12 = smov %s683_s13 }
 0x11c   : > { %p13_p7 = scmp.ge.s32.totalorder %s16_s19, 10   ;;  %s886_s13 = smov %s687_s14 }
 0x11d   : > { %s887_s14 = smov %s802_s30  ;;  %s888_s15 = smov %s699_s17 }
 0x11e   : > { %s889_s16 = smov %s703_s18  ;;  %s890_s17 = smov %s893_s22 }
 0x11f   : > { %s891_s18 = smov %s897_s23  ;;  %15 = sbr.rel (!%p13_p7) target bundleno = 5 (0x5), region = 81 }
 0x126   :  { %406 = vsyncpa [#allocation4], 1 }
 0x127   :  { %408 = vsyncpa [#allocation4 + $0x1], 1 }

</bundles_post_ra>
